<compile_context>
chip_gen: v7x
topology: tpu7x:2x2x1
jax: 0.10.0
libtpu: 0.0.40
codegen_flags: <defaults>
</compile_context>

<pallas_src>
from functools import lru_cache, partial

import jax
import jax.numpy as jnp
from jax.experimental import pallas as pl
from jax.experimental.pallas import tpu as pltpu


def _round_up(a, b):
    return ((a + b - 1) // b) * b


@lru_cache(maxsize=None)
def _roll_sign():
    """Probe pltpu.roll's shift convention once on-device (outside jit).

    We need shifted[p] = slab[(p + delta) % n].  pltpu.roll matches jnp.roll
    (result[i] = x[(i - shift) % n]) on current JAX, i.e. shift = -delta, but the
    direction is load-bearing for conv correctness, so probe instead of assuming.
    """
    def k(x_ref, o_ref):
        o_ref[...] = pltpu.roll(x_ref[...], shift=1, axis=1)

    x = jnp.tile(jnp.arange(128, dtype=jnp.float32)[None, :], (8, 1))
    y = pl.pallas_call(k, out_shape=jax.ShapeDtypeStruct((8, 128), jnp.float32))(x)
    first = float(y[0, 0])
    if first == 127.0:          # jnp.roll convention: result[i] = x[i - shift]
        return -1
    if first == 1.0:            # opposite convention: result[i] = x[i + shift]
        return 1
    raise RuntimeError(f"unexpected pltpu.roll semantics (probe got {first})")


def resblock_kernel(x_ref, w1_ref, b1_ref, w2_ref, b2_ref, mask_ref, out_ref,
                    *, K, P, width, hw_pad, k_pad, roll_sign):
    # x_ref   : (G, hw_pad)       PACK images packed along sublanes, lane-dense spatial
    # w*_ref  : (G, k_pad)        block-diagonal im2col weights (see _pack_conv_weight)
    # b*_ref  : (G, 1)            packed bias
    # mask_ref: (K*K, 1, hw_pad)  per-tap 0/1 boundary masks (host precomputed)
    # out_ref : (G, hw_pad)
    G = x_ref.shape[0]
    x = jnp.maximum(x_ref[...].astype(jnp.float32), 0.0)   # relu(img), reused by residual

    deltas = [(ky - P) * width + (kx - P) for ky in range(K) for kx in range(K)]

    def conv(slab, w_ref, b_ref):
        # Build the im2col column block entirely in registers: one XLU roll + one mask
        # multiply per tap (no VMEM scratch, no misaligned halo loads), then a single
        # aligned (G, k_pad) x (k_pad, hw_pad) MXU matmul does the whole channel/tap
        # mix + accumulation (no serial VPU accumulator chain, no weight lane slices).
        rows = []
        for t, d in enumerate(deltas):
            if d == 0:
                rows.append(slab)                                   # centre tap: all valid
            else:
                shifted = pltpu.roll(slab, shift=(roll_sign * d) % hw_pad, axis=1)
                rows.append(shifted * mask_ref[t])                  # kill wrapped lanes
        n_zero = k_pad - K * K * G
        if n_zero:                                                  # pad contraction dim to a
            rows.append(jnp.zeros((n_zero, hw_pad), jnp.float32))   # 128 multiple: both matmul
        col = jnp.concatenate(rows, axis=0)                         # operands fully tile-aligned
        y = jnp.dot(w_ref[...], col, preferred_element_type=jnp.float32)
        return y + b_ref[...]                                       # bias: (G,1) lane-broadcast

    h1 = jnp.maximum(conv(x, w1_ref, b1_ref), 0.0)
    out_ref[...] = (x + conv(h1, w2_ref, b2_ref)).astype(out_ref.dtype)


def _pack_conv_weight(w_oihw, K, C, pack, k_pad):
    """OIHW conv weight -> (G, k_pad) im2col weight, block-diagonal over packed images.

    W[p*C + co, t*G + p*C + ci] = w[co, ci, ky, kx]  with t = ky*K + kx, G = pack*C.
    """
    G = pack * C
    wt = jnp.transpose(w_oihw, (2, 3, 0, 1)).reshape(K * K, C, C).astype(jnp.float32)
    w_big = jnp.zeros((G, k_pad), jnp.float32)
    for t in range(K * K):
        for p in range(pack):
            w_big = w_big.at[p * C:(p + 1) * C,
                             t * G + p * C: t * G + (p + 1) * C].set(wt[t])
    return w_big


def _make_tap_masks(H, W, K, P, hw_pad):
    """(K*K, 1, hw_pad) f32 0/1 masks: 1 where the tap's source pixel is inside the image."""
    hw = H * W
    hh = jnp.arange(hw, dtype=jnp.int32) // W
    ww = jnp.arange(hw, dtype=jnp.int32) % W
    rows = []
    for ky in range(K):
        for kx in range(K):
            dy, dx = ky - P, kx - P
            valid = (hh + dy >= 0) & (hh + dy < H) & (ww + dx >= 0) & (ww + dx < W)
            rows.append(valid)
    m = jnp.stack(rows).astype(jnp.float32)                     # (K*K, hw)
    if hw_pad != hw:
        m = jnp.pad(m, ((0, 0), (0, hw_pad - hw)))              # padded lanes always invalid
    return m.reshape(K * K, 1, hw_pad)


def resblock_forward(img_nchw, w1_oihw, b1, w2_oihw, b2, *, K, P):
    """img_nchw: (N, C, H, W) f32; weights in PyTorch OIHW layout; returns NCHW."""
    N, C, H, W = img_nchw.shape
    assert 2 * P == K - 1, "ResBlock kernel assumes stride 1 and P == (K-1)//2"

    hw = H * W
    hw_pad = _round_up(hw, 128)          # lane-dense, unmasked stores even for odd H*W
    pack = max(1, 8 // C)                # fill all 8 sublanes of every vreg
    while pack > 1 and N % pack:
        pack -= 1
    G = pack * C
    nb = N // pack
    k_pad = _round_up(K * K * G, 128)    # aligned contraction dim for the MXU matmul

    # Free reshape (no transposes): (N, C, H, W) -> (N//pack, pack*C, H*W); pad lanes.
    x_pack = img_nchw.reshape(nb, G, hw)
    if hw_pad != hw:
        x_pack = jnp.pad(x_pack, ((0, 0), (0, 0), (0, hw_pad - hw)))

    w1_big = _pack_conv_weight(w1_oihw, K, C, pack, k_pad)
    w2_big = _pack_conv_weight(w2_oihw, K, C, pack, k_pad)
    b1_col = jnp.tile(b1.astype(jnp.float32), pack).reshape(G, 1)
    b2_col = jnp.tile(b2.astype(jnp.float32), pack).reshape(G, 1)
    masks = _make_tap_masks(H, W, K, P, hw_pad)

    kern = partial(resblock_kernel, K=K, P=P, width=W, hw_pad=hw_pad, k_pad=k_pad,
                   roll_sign=_roll_sign())
    out = pl.pallas_call(
        kern,
        out_shape=jax.ShapeDtypeStruct((nb, G, hw_pad), img_nchw.dtype),
        grid_spec=pltpu.PrefetchScalarGridSpec(
            num_scalar_prefetch=0,
            grid=(nb,),
            in_specs=[
                pl.BlockSpec((None, G, hw_pad), lambda b: (b, 0, 0)),   # packed images
                pl.BlockSpec((G, k_pad), lambda b: (0, 0)),             # conv1 weights (resident)
                pl.BlockSpec((G, 1), lambda b: (0, 0)),                 # conv1 bias
                pl.BlockSpec((G, k_pad), lambda b: (0, 0)),             # conv2 weights
                pl.BlockSpec((G, 1), lambda b: (0, 0)),                 # conv2 bias
                pl.BlockSpec((K * K, 1, hw_pad), lambda b: (0, 0, 0)),  # tap masks
            ],
            out_specs=pl.BlockSpec((None, G, hw_pad), lambda b: (b, 0, 0)),
        ),
        compiler_params=pltpu.CompilerParams(
            dimension_semantics=("parallel",)),   # batch steps shard across v7x TCs when nb >= 2
    )(x_pack, w1_big, b1_col, w2_big, b2_col, masks)

    if hw_pad != hw:
        out = out[:, :, :hw]
    return out.reshape(N, C, H, W)


def resblock_ref(img, w1, b1, w2, b2, P):
    """Pure-JAX reference (NCHW), same semantics as the PyTorch module."""
    x = jnp.maximum(img, 0.0)

    def conv(inp, w, b):
        y = jax.lax.conv_general_dilated(
            inp, w, window_strides=(1, 1), padding=((P, P), (P, P)),
            dimension_numbers=('NCHW', 'OIHW', 'NCHW'),
            precision=jax.lax.Precision.HIGHEST)
        return y + b[None, :, None, None]

    h = jnp.maximum(conv(x, w1, b1), 0.0)
    return x + conv(h, w2, b2)


if __name__ == "__main__":
    # Shapes consistent with ResBlock(channel=4, kernel=3, pad=1)
    N, C, H, W = 2, 4, 16, 16
    K, P = 3, 1

    key = jax.random.PRNGKey(0)
    k_img, k_w1, k_b1, k_w2, k_b2 = jax.random.split(key, 5)

    img = jax.random.normal(k_img, (N, C, H, W), dtype=jnp.float32)
    # PyTorch Conv2d-style parameters (OIHW weight, (C,) bias).
    fan_in = C * K * K
    bound = 1.0 / (fan_in ** 0.5)
    w1 = jax.random.uniform(k_w1, (C, C, K, K), jnp.float32, -bound, bound)
    b1 = jax.random.uniform(k_b1, (C,), jnp.float32, -bound, bound)
    w2 = jax.random.uniform(k_w2, (C, C, K, K), jnp.float32, -bound, bound)
    b2 = jax.random.uniform(k_b2, (C,), jnp.float32, -bound, bound)

    out = jax.block_until_ready(resblock_forward(img, w1, b1, w2, b2, K=K, P=P))
    ref = jax.block_until_ready(resblock_ref(img, w1, b1, w2, b2, P))

    assert out.shape == (N, C, H, W)
    # Tolerance allows for MXU f32 multi-pass behaviour; any logic bug is >> 2e-3 off.
    assert jnp.allclose(out, ref, atol=2e-3, rtol=2e-3), \
        f"max abs err = {jnp.max(jnp.abs(out - ref))}"

    print("KERNEL_OK")
</pallas_src>

<mosaic_0001>
module attributes {stable_mosaic.version = 11 : i64} {
  func.func @k(%arg0: memref<8x128xf32, #tpu.memory_space<vmem>>, %arg1: memref<8x128xf32, #tpu.memory_space<vmem>>) attributes {dimension_semantics = [], scalar_prefetch = 0 : i64, scratch_operands = 0 : i64, tpu.core_type = #tpu.core_type<tc>} {
    %c0 = arith.constant 0 : index
    %c0_0 = arith.constant 0 : index
    %0 = vector.load %arg0[%c0, %c0_0] : memref<8x128xf32, #tpu.memory_space<vmem>>, vector<8x128xf32>
    %c1_i32 = arith.constant 1 : i32
    %1 = tpu.dynamic_rotate %0 by %c1_i32 dim 1 : vector<8x128xf32>, i32 -> vector<8x128xf32>
    %c0_1 = arith.constant 0 : index
    %c0_2 = arith.constant 0 : index
    %2 = vector.load %arg1[%c0_1, %c0_2] : memref<8x128xf32, #tpu.memory_space<vmem>>, vector<8x128xf32>
    tpu.vector_store %arg1[%c0_1, %c0_2], %1 {strides = array<i32>} : memref<8x128xf32, #tpu.memory_space<vmem>>, vector<8x128xf32>,
    return
  }
}

</mosaic_0001>

<bundles_post_ra>
// kernel: tpu_custom_call.1
= control target key start
LH: loop header
LB: loop body
LE: loop exit
PB: predicated region body
PF: predicated region fallthrough
CT: control target
= control target key end

     0   :  { %6 = vsyncpa [#allocation3], 0  ;;  %s128_s0 = inlined_call_operand.hbm [shape: f32[8,128], index: 0, kind: input, shape index: {}]   ;;  %s129_s1 = inlined_call_operand.hbm [shape: f32[8,128], index: 1, kind: output, shape index: {}]  }
   0x1   :  { %7 = vsyncpa [#allocation4], 0  ;;  %s91_s6 = smov [#allocation2]   ;;  %s43_s10 = scalar_lea.hbm %s128_s0, 128 }
   0x2   :  { %s14_s7 = sshll.u32 %s91_s6, 4  ;;  %p44_p0 = scmp.ne.s32.totalorder %s128_s0, %s43_s10  ;;  %s15_s7 = int_to_ptr.vmem [resolvable:$true] %s14_s7 }
   0x3   :  { %p47_p1 = scmp.lt.u32.totalorder %s43_s10, %s128_s0 }
   0x5   :  { %p49_p2 = pnand %p47_p1, %p44_p0 }
   0x7   :  { %52 = shalt.err (!%p49_p2)
}
   0x8   :  { %s53_s15 = scalar_lea.vmem %s15_s7, 128  ;;  %p58_p4 = scmp.lt.s32.totalorder %s15_s7, %s15_s7 }
   0x9   :  { %p54_p3 = scmp.ne.s32.totalorder %s15_s7, %s53_s15  ;;  %p59_p5 = scmp.lt.s32.totalorder %s53_s15, %s53_s15 }
   0xb   :  { %p60_p6 = por %p59_p5, %p58_p4 }
   0xd   :  { %p61_p7 = pnand %p60_p6, %p54_p3 }
   0xf   :  { %64 = shalt.err (!%p61_p7)
}
  0x10   :  { %17 = dma.hbm_to_vmem [thread:$0]  %s128_s0, 128, %s15_s7, [#allocation3]  }
  0x11   :  { %87 = dma.done.wait [#allocation3], 128  }
  0x12   :  { %88 = vsyncadd [#allocation3], 4294967168  ;;  %v21_v0 = vld [vmem:[#allocation2] sm:$0xff]  ;;  %s92_s18 = smov 1   ;;  %s93_s19 = smov [#allocation5]  }
  0x13   :  { %22 = vrot.lane.b32.xlu0 %v21_v0, %s92_s18  ;;  %s31_s20 = sshll.u32 %s93_s19, 4  ;;  %s32_s20 = int_to_ptr.vmem [resolvable:$true] %s31_s20 }
  0x14   :  { %s65_s21 = scalar_lea.vmem %s32_s20, 128  ;;  %p70_p9 = scmp.lt.s32.totalorder %s32_s20, %s32_s20 }
  0x15   :  { %p66_p8 = scmp.ne.s32.totalorder %s32_s20, %s65_s21  ;;  %p71_p10 = scmp.lt.s32.totalorder %s65_s21, %s65_s21 }
  0x17   :  { %p72_p11 = por %p71_p10, %p70_p9 }
  0x19   :  { %p73_p12 = pnand %p72_p11, %p66_p8 }
  0x85   :  { %v23_v1 = vpop.permute.xlu0 %22 }
  0x86   :  { %24 = vst [vmem:[#allocation5] sm:$0xff] %v23_v1 }
  0x87   :  { %76 = shalt.err (!%p73_p12)
}
  0x88   :  { %s77_s0 = scalar_lea.hbm %s129_s1, 128 }
  0x89   :  { %p78_p13 = scmp.ne.s32.totalorder %s129_s1, %s77_s0  ;;  %p81_p0 = scmp.lt.u32.totalorder %s77_s0, %s129_s1 }
  0x8b   :  { %p83_p1 = pnand %p81_p0, %p78_p13 }
  0x8d   :  { %86 = shalt.err (!%p83_p1)
}
  0x8e   :  { %34 = dma.vmem_to_hbm [thread:$0]  %s32_s20, 128, %s129_s1, [#allocation4]  }
  0x8f   :  { %89 = dma.done.wait [#allocation4], 128  }
  0x90   :  { %90 = vsyncadd [#allocation4], 4294967168 }
  0x91   :  { %38 = vsyncpa [#allocation3], 1 }
  0x92   :  { %39 = vsyncpa [#allocation4], 1 }

</bundles_post_ra>
